<compile_context>
chip_gen: v7x
topology: tpu7x:2x2x1
jax: 0.10.0
libtpu: 0.0.40
codegen_flags: <defaults>
</compile_context>

<pallas_src>
import functools

import jax
import jax.numpy as jnp
from jax.experimental import pallas as pl
from jax.experimental.pallas import tpu as pltpu


def _round_up(x, m):
    return ((x + m - 1) // m) * m


# ---------------------------------------------------------------------------
# Pallas kernel: one (TILE_M, K) patch tile @ (K, E) weight + bias
# ---------------------------------------------------------------------------
def _tubelet_proj_kernel(p_ref, w_ref, b_ref, o_ref):
    # p_ref: (TILE_M, K) bf16 flattened tubelets (streamed per grid step)
    # w_ref: (K, E)      bf16 flattened Conv3d weight (VMEM resident)
    # b_ref: (1, E)      f32 bias (VMEM resident)
    # o_ref: (TILE_M, E) output in the model dtype
    acc = jnp.dot(p_ref[...], w_ref[...], preferred_element_type=jnp.float32)
    o_ref[...] = (acc + b_ref[...]).astype(o_ref.dtype)


def _choose_tile_m(M, K, E, out_itemsize):
    """Largest M-tile (<=1024, multiple of 8) within a ~40 MiB VMEM budget,
    with >=2 grid steps when possible (v7x megacore) and preferring exact
    divisors of M (avoids output padding / post-kernel slice)."""
    m8 = _round_up(M, 8)
    if m8 <= 16:
        return m8
    budget = 40 * 1024 * 1024
    resident = K * E * 2 + 256 * E * 4                # bf16 weight + f32 bias
    per_row = 2 * (K * 2) + 2 * (E * out_itemsize)    # 2x-buffered in/out rows
    cap = max(8, (budget - resident) // max(per_row, 1))
    tile = 1024
    while tile > cap and tile > 8:
        tile //= 2
    while tile * 2 > m8 and tile > 8:                 # >= 2 grid steps
        tile //= 2
    tile = max(8 * (tile // 8), 8)
    for t in range(tile, tile // 2, -8):              # prefer exact divisor of M
        if M % t == 0:
            return t
    return tile


def _projection_matmul(patches, w, b, out_dtype, tile_m):
    """patches: (M_pad, K) bf16, w: (K, E) bf16, b: (1, E) f32 -> (M_pad, E)."""
    M, K = patches.shape
    E = w.shape[1]
    grid_m = M // tile_m
    return pl.pallas_call(
        _tubelet_proj_kernel,
        out_shape=jax.ShapeDtypeStruct((M, E), out_dtype),
        grid=(grid_m,),
        in_specs=[
            # Patch rows streamed (double-buffered) per M-tile; K kept un-padded
            # via the full-dim exception on the last axis.
            pl.BlockSpec((tile_m, K), lambda i: (i, 0)),
            # Weight / bias: whole-array VMEM residents -> single-buffered.
            pl.BlockSpec(memory_space=pltpu.MemorySpace.VMEM),
            pl.BlockSpec(memory_space=pltpu.MemorySpace.VMEM),
        ],
        out_specs=pl.BlockSpec((tile_m, E), lambda i: (i, 0)),
        compiler_params=pltpu.CompilerParams(
            # Independent M-tiles -> shard across TensorCores (v7x megacore).
            dimension_semantics=("parallel",),
            # Headroom above the 16/32 MiB default scoped VMEM; safe on every
            # chip (64 MiB physical per core on v7x).
            vmem_limit_bytes=48 * 1024 * 1024,
        ),
    )(patches, w, b)


# ---------------------------------------------------------------------------
# TubeletEmbedding forward
# ---------------------------------------------------------------------------
@functools.partial(jax.jit, static_argnames=("patch_size",))
def tubelet_embedding(x, weight, bias, *, patch_size):
    """
    x:      (B, C, T, H, W)    -- NCDHW, like PyTorch Conv3d input
    weight: (E, C, pt, ph, pw) -- PyTorch Conv3d weight layout
    bias:   (E,)
    returns (B, N, E), N = (T//pt)*(H//ph)*(W//pw), patches in (d, h, w) order
    """
    pt, ph, pw = patch_size
    B, C, T, H, W = x.shape
    E = weight.shape[0]
    Dt, Dh, Dw = T // pt, H // ph, W // pw
    K = C * pt * ph * pw
    N = Dt * Dh * Dw
    M = B * N

    tile_m = _choose_tile_m(M, K, E, jnp.dtype(x.dtype).itemsize)
    M_pad = _round_up(M, tile_m)

    # Non-overlapping tubelet extraction, flattened as (c, kt, kh, kw) to match
    # the Conv3d weight reduction order.  Cast to bf16 *before* the permute so
    # any materialized intermediate is half the bytes.
    xp = x.astype(jnp.bfloat16).reshape(B, C, Dt, pt, Dh, ph, Dw, pw)
    xp = jnp.transpose(xp, (0, 2, 4, 6, 1, 3, 5, 7))  # (B, Dt, Dh, Dw, C, pt, ph, pw)
    patches = xp.reshape(M, K)
    if M_pad != M:
        patches = jnp.pad(patches, ((0, M_pad - M), (0, 0)))

    w2d = weight.reshape(E, K).T.astype(jnp.bfloat16)          # (K, E) bf16
    b2d = bias.astype(jnp.float32).reshape(1, E)               # (1, E) f32

    out = _projection_matmul(patches, w2d, b2d, x.dtype, tile_m)  # (M_pad, E)
    if M_pad != M:
        out = out[:M]
    return out.reshape(B, N, E)


# ---------------------------------------------------------------------------
# Pure-JAX reference (lax.conv_general_dilated, full f32) for verification
# ---------------------------------------------------------------------------
def tubelet_embedding_ref(x, weight, bias, *, patch_size):
    y = jax.lax.conv_general_dilated(
        x, weight,
        window_strides=patch_size,
        padding="VALID",
        dimension_numbers=("NCDHW", "OIDHW", "NCDHW"),
    )
    y = y + bias.reshape(1, -1, 1, 1, 1)
    B, E = y.shape[0], y.shape[1]
    y = y.reshape(B, E, -1)             # view(B, E, N)
    return jnp.transpose(y, (0, 2, 1))  # transpose(1, 2)


if __name__ == "__main__":
    # Small shapes consistent with the module: in_channels fixed at 10.
    B, C, T, H, W = 2, 10, 4, 8, 8
    embed_dim = 32
    patch_size = (2, 2, 2)

    key = jax.random.PRNGKey(0)
    kx, kw, kb = jax.random.split(key, 3)

    x = jax.random.normal(kx, (B, C, T, H, W), dtype=jnp.float32)
    weight = 0.02 * jax.random.normal(
        kw, (embed_dim, C, *patch_size), dtype=jnp.float32)
    bias = 0.01 * jax.random.normal(kb, (embed_dim,), dtype=jnp.float32)

    out = tubelet_embedding(x, weight, bias, patch_size=patch_size)
    out = jax.block_until_ready(out)

    ref = tubelet_embedding_ref(x, weight, bias, patch_size=patch_size)
    N = (T // patch_size[0]) * (H // patch_size[1]) * (W // patch_size[2])
    assert out.shape == (B, N, embed_dim)
    # bf16 operands with f32 accumulation vs. a full-f32 conv reference.
    assert jnp.allclose(out, ref, atol=2e-2, rtol=2e-2), "mismatch vs reference"

    print("KERNEL_OK")
</pallas_src>

<mosaic_0001>
module attributes {stable_mosaic.version = 11 : i64} {
  func.func @_tubelet_proj_kernel(%arg0: i32, %arg1: memref<32x80xbf16, #tpu.memory_space<vmem>>, %arg2: memref<80x32xbf16, #tpu.memory_space<vmem>>, %arg3: memref<1x32xf32, #tpu.memory_space<vmem>>, %arg4: memref<32x32xf32, #tpu.memory_space<vmem>>) attributes {dimension_semantics = [#tpu.dimension_semantics<parallel>], iteration_bounds = array<i64: 2>, scalar_prefetch = 0 : i64, scratch_operands = 0 : i64, tpu.core_type = #tpu.core_type<tc>, window_params = [{transform_indices = @transform_0, window_bounds = array<i64: 32, 80>}, {pipeline_mode = #tpu.pipeline_mode<synchronous>, transform_indices = @transform_1, window_bounds = array<i64: 80, 32>}, {pipeline_mode = #tpu.pipeline_mode<synchronous>, transform_indices = @transform_2, window_bounds = array<i64: 1, 32>}, {transform_indices = @transform_3, window_bounds = array<i64: 32, 32>}]} {
    %c0 = arith.constant 0 : index
    %c0_0 = arith.constant 0 : index
    %0 = vector.load %arg1[%c0, %c0_0] : memref<32x80xbf16, #tpu.memory_space<vmem>>, vector<32x80xbf16>
    %c0_1 = arith.constant 0 : index
    %c0_2 = arith.constant 0 : index
    %1 = vector.load %arg2[%c0_1, %c0_2] : memref<80x32xbf16, #tpu.memory_space<vmem>>, vector<80x32xbf16>
    %cst = arith.constant dense<0.000000e+00> : vector<32x32xf32>
    %2 = tpu.matmul %0, %1, %cst {dimension_numbers = #tpu.dot_dimension_numbers<[1], [0], [0], [1], [0, 0, 1, 1], [], []>} : vector<32x80xbf16>, vector<80x32xbf16>, vector<32x32xf32> -> vector<32x32xf32>
    %c0_3 = arith.constant 0 : index
    %c0_4 = arith.constant 0 : index
    %3 = vector.load %arg3[%c0_3, %c0_4] : memref<1x32xf32, #tpu.memory_space<vmem>>, vector<1x32xf32>
    %4 = vector.broadcast %3 : vector<1x32xf32> to vector<32x32xf32>
    %5 = arith.addf %2, %4 : vector<32x32xf32>
    %c0_5 = arith.constant 0 : index
    %c0_6 = arith.constant 0 : index
    %6 = vector.load %arg4[%c0_5, %c0_6] : memref<32x32xf32, #tpu.memory_space<vmem>>, vector<32x32xf32>
    tpu.vector_store %arg4[%c0_5, %c0_6], %5 {strides = array<i32>} : memref<32x32xf32, #tpu.memory_space<vmem>>, vector<32x32xf32>,
    return
  }
  func.func @transform_0(%arg0: i32) -> (i32, i32) {
    %c0_i32 = arith.constant 0 : i32
    %c0_i32_0 = arith.constant 0 : i32
    return %arg0, %c0_i32 : i32, i32
  }
  func.func @transform_1(%arg0: i32) -> (i32, i32) {
    %c0_i32 = arith.constant 0 : i32
    %c0_i32_0 = arith.constant 0 : i32
    %c0_i32_1 = arith.constant 0 : i32
    return %c0_i32, %c0_i32_0 : i32, i32
  }
  func.func @transform_2(%arg0: i32) -> (i32, i32) {
    %c0_i32 = arith.constant 0 : i32
    %c0_i32_0 = arith.constant 0 : i32
    %c0_i32_1 = arith.constant 0 : i32
    return %c0_i32, %c0_i32_0 : i32, i32
  }
  func.func @transform_3(%arg0: i32) -> (i32, i32) {
    %c0_i32 = arith.constant 0 : i32
    %c0_i32_0 = arith.constant 0 : i32
    return %arg0, %c0_i32 : i32, i32
  }
}

</mosaic_0001>

<bundles_post_ra>
// kernel: tubelet_embedding.1
= control target key start
LH: loop header
LB: loop body
LE: loop exit
PB: predicated region body
PF: predicated region fallthrough
CT: control target
= control target key end

     0   :  { %8 = vsyncpa [#allocation3], 0  ;;  %s674_s0 = inlined_call_operand.vmem [shape: bf16[64,80], index: 0, kind: input, shape index: {}]   ;;  %s675_s1 = inlined_call_operand.vmem [shape: bf16[80,32], index: 1, kind: input, shape index: {}]   ;;  %s676_s2 = inlined_call_operand.vmem [shape: f32[1,32], index: 2, kind: input, shape index: {}]   ;;  %s677_s3 = inlined_call_operand.hbm [shape: f32[64,32], index: 3, kind: output, shape index: {}]  }
   0x1   :  { %10 = vsyncpa [#allocation3 + $0x1], 0  ;;  %s550_s12 = smov 0   ;;  %s552_s13 = smov 0  }
   0x2   :  { %s554_s14 = smov 0   ;;  %s556_s15 = smov 0  }
   0x3 LB: > { %s571_s16 = sadd.s32 4294967295, %s525_s15   ;;  %s371_s17 = sadd.s32 4294967294, %s525_s15   ;;  %s525_s15 = sphi %s556_s15, %s683_s15   ;;  %s521_s14 = sphi %s554_s14, %s682_s14   ;;  %s517_s13 = sphi %s552_s13, %s681_s13   ;;  %s513_s12 = sphi %s550_s12, %s680_s12  }
   0x4   : > { %s575_s18 = sadd.s32 1, %s525_s15   ;;  %s91_s19 = sadd.s32 1, %s521_s14 }
   0x5   : > { %s88_s20 = ssub.s32 %s525_s15, %s575_s18  ;;  %p101_p0 = scmp.ne.s32.totalorder %s521_s14, %s517_s13 }
   0x6   : > { %p89_p1 = scmp.eq.s32.totalorder %s88_s20, 0  ;;  %p102_p2 = scmp.eq.s32.totalorder %s571_s16, 1 }
   0x7   : > { %p107_p3 = scmp.ne.s32.totalorder %s517_s13, %s513_s12  ;;  %p108_p4 = scmp.eq.s32.totalorder %s371_s17, 1 }
   0x8   : > { %s586_s21 = scalar_select %p89_p1, %s521_s14, %s91_s19  }
   0x9   : > { %p588_p5 = por %p102_p2, %p101_p0  ;;  %p592_p6 = por %p108_p4, %p107_p3 }
   0xa   : > { %p374_p7 = scmp.ge.s32.totalorder %s525_s15, 1  ;;  %p141_p8 = scmp.lt.s32.totalorder %s525_s15, 3 }
   0xc   : > { %p142_p9 = pnand %p374_p7, %p141_p8 }
   0xd   : > { %v456_v0 = vld [vmem:[%s675_s1] sm:$0xff] (!%p142_p9)   ;;  %s376_s26 = sshll.u32 (!%p142_p9), %s571_s16, 2  ;;  %v457_v1 = vld [vmem:[%s675_s1 + $0x8] sm:$0xff] (!%p142_p9)   ;;  %v458_v2 = vld [vmem:[%s675_s1 + $0x10] sm:$0xff] (!%p142_p9)   ;;  %vm234_vm0 = vcmask (!%p142_p9), 654336   ;;  %s162_s17 = sand.u32 (!%p142_p9), 1, %s517_s13  }
   0xe   : > { %145 = sbr.rel (%p142_p9) target bundleno = 266 (0x10a), region = 32  ;;  %p166_p10 = scmp.lt.s32.totalorder (!%p142_p9), %s376_s26, 7  ;;  %401 = vmatprep.subr.bf16.mxu0 (!%p142_p9), %v456_v0  ;;  %v459_v4 = vld [vmem:[%s675_s1 + $0x18] sm:$0xff] (!%p142_p9)   ;;  %v460_v5 = vld [vmem:[%s675_s1 + $0x20] sm:$0xff] (!%p142_p9)   ;;  %vm290_vm1 = vcmask (!%p142_p9), 261120  }
   0xf   : > { %402 = vmatpush3.bf16.msra.mxu0 (!%p142_p9), %v456_v0  ;;  %s375_s19 = sshll.u32 (!%p142_p9), %s162_s17, 5  ;;  %v378_v7 = vld [vmem:[%s676_s2] ss:$0 sm:$0xff] (!%p142_p9)  ;;  %s393_s27 = sshll.u32 (!%p142_p9), %s571_s16, 9 }
  0x10   : > { %403 = vmatprep.subr.bf16.mxu0 (!%p142_p9), %v457_v1  ;;  %s164_s25 = scalar_lea.vmem (!%p142_p9), [#allocation2], %s375_s19  ;;  %s628_s30 = scalar_lea.hbm (!%p142_p9), %s677_s3, %s393_s27 }
  0x11   : > { %s633_s16 = scalar_lea.sflag (!%p142_p9), [#allocation3], %s162_s17  ;;  %s527_s5 = smov (!%p142_p9), [#allocation2]  }
  0x12   : > { %s467_s6 = sshll.u32 (!%p142_p9), %s527_s5, 4  ;;  %s468_s6 = int_to_ptr.vmem [resolvable:$false] %s467_s6 }
  0x13   : > { %404 = vmatpush3.bf16.msra.mxu0 (!%p142_p9), %v457_v1 }
  0x14   : > { %405 = vmatprep.subr.bf16.mxu0 (!%p142_p9), %v458_v2 }
  0x15   : > { %s685_s26 = smov (!%p166_p10, %s376_s26), 7 }
  0x16   : > { %s377_s4 = sshll.u32 %s685_s26, 2  ;;  %s309_s26 = sshll.u32 %s164_s25, 4  ;;  %s623_s26 = int_to_ptr.vmem [resolvable:$true] %s309_s26 }
  0x17   : > { %s169_s7 = scalar_lea.vmem %s674_s0, %s377_s4  ;;  %406 = vmatpush3.bf16.msra.mxu0 %v458_v2  ;;  %s463_s4 = scalar_lea.vmem %s623_s26, 512 }
  0x18   : > { %v461_v3 = vld [vmem:[%s169_s7] sm:$0xff]   ;;  %407 = vmatprep.subr.bf16.mxu0 %v459_v4  ;;  %v462_v6 = vld [vmem:[%s169_s7 + $0x8] sm:$0xff]   ;;  %p464_p11 = scmp.ne.s32.totalorder %s623_s26, %s463_s4  ;;  %s469_s7 = scalar_lea.vmem %s468_s6, 1024 }
  0x19   : > { %411 = vmatprep.mubr.msk.bf16.mxu0 %vm234_vm0, %v461_v3  ;;  %p470_p0 = scmp.lt.s32.totalorder %s623_s26, %s468_s6  ;;  %p471_p1 = scmp.lt.s32.totalorder %s469_s7, %s463_s4 }
  0x1a   : > { %p465_p12 = pnand %p464_p11, %p588_p5 }
  0x1b   : > { %408 = vmatpush3.bf16.msra.mxu0 %v459_v4  ;;  %p472_p2 = por %p471_p1, %p470_p0 }
  0x1c   : > { %409 = vmatprep.subr.bf16.mxu0 %v460_v5  ;;  %p466_p13 = pneg %p465_p12 }
  0x1e   : > { %p473_p3 = pnand %p472_p2, %p466_p13 }
  0x1f   : > { %410 = vmatpush3.bf16.msra.mxu0 %v460_v5 }
  0x22   : > { %412 = vmatmul.mubr.msk.bf16.vlgmr.msra.gmra.mrb[0].mxu0 %vm234_vm0, %v462_v6 }
  0xf5   : > { %v413_v8 = vpop.f32.mrb[0].mxu0 }
  0xf6   : > { %v284_v9 = vadd.f32 %v413_v8, %v378_v7  ;;  %v275_v10 = vpop.f32.mrb[1].mxu0 }
  0xf7   : > { %v276_v11 = vadd.f32 %v378_v7, %v275_v10  ;;  %v414_v12 = vpop.f32.mrb[2].mxu0 }
  0xf8   : > { %293 = vst.msk [vmem:[%s164_s25 + $0x10] sm:$0xff] %vm290_vm1, %v284_v9  ;;  %v287_v13 = vadd.f32 %v414_v12, %v378_v7  ;;  %v278_v14 = vpop.f32.mrb[3].mxu0 }
  0xf9   : > { %291 = vst.msk [vmem:[%s164_s25] sm:$0xff] %vm290_vm1, %v276_v11  ;;  %v279_v15 = vadd.f32 %v378_v7, %v278_v14 }
  0xfa   : > { %294 = vst.msk [vmem:[%s164_s25 + $0x18] sm:$0xff] %vm290_vm1, %v287_v13 }
  0xfb   : > { %292 = vst.msk [vmem:[%s164_s25 + $0x8] sm:$0xff] %vm290_vm1, %v279_v15 }
  0xfc   : > { %476 = shalt.err (!%p473_p3)
}
  0xfd   : > { %s477_s8 = scalar_lea.hbm %s628_s30, 512  ;;  %s481_s11 = scalar_lea.hbm %s677_s3, 1024 }
  0xfe   : > { %p478_p4 = scmp.ne.s32.totalorder %s628_s30, %s477_s8  ;;  %p482_p9 = scmp.lt.u32.totalorder %s628_s30, %s677_s3 }
  0xff   : > { %p483_p10 = scmp.lt.u32.totalorder %s481_s11, %s477_s8  ;;  %p485_p12 = scmp.lt.u32.totalorder %s477_s8, %s628_s30 }
 0x100   : > { %p479_p7 = pnand %p478_p4, %p588_p5 }
 0x101   : > { %p484_p11 = por %p483_p10, %p482_p9 }
 0x102   : > { %p480_p8 = pneg %p479_p7 }
 0x103   : > { %p486_p13 = por %p485_p12, %p484_p11 }
 0x105   : > { %p487_p0 = pnand %p486_p13, %p480_p8 }
 0x107   : > { %490 = shalt.err (!%p487_p0)
}
 0x108   : > { %s528_s20 = smov 128   ;;  %s529_s24 = smov 8  }
 0x109   : > { %415 = dma.vmem_to_hbm [thread:$0]  (%p588_p5), %s623_s26, 512, %s628_s30, %s633_s16, %s528_s20, %s528_s20, %s529_s24  }
 0x10a PF: > { %p421_p1 = scmp.ge.s32.totalorder %s525_s15, 2  ;;  %s324_s25 = sand.u32 1, %s513_s12  }
 0x10b   : > { %s325_s27 = scalar_lea.sflag [#allocation3], %s324_s25 }
 0x10c   : > { %p418_p2 = pnand %p421_p1, %p592_p6 }
 0x10e   : > { %508 = dma.done.wait (!%p418_p2), %s325_s27, 512  }
 0x10f   : > { %510 = vsyncadd (!%p418_p2), %s325_s27, 4294966784  ;;  %p13_p3 = scmp.ge.s32.totalorder %s575_s18, 4   ;;  %s680_s12 = smov %s517_s13 }
 0x110   : > { %s681_s13 = smov %s521_s14  ;;  %s682_s14 = smov %s586_s21 }
 0x111   : > { %s683_s15 = smov %s575_s18  ;;  %15 = sbr.rel (!%p13_p3) target bundleno = 3 (0x3), region = 67 }
 0x118   :  { %330 = vsyncpa [#allocation3], 1 }
 0x119   :  { %332 = vsyncpa [#allocation3 + $0x1], 1 }

</bundles_post_ra>
